<compile_context>
chip_gen: v5e
topology: v5e:2x2
jax: 0.10.0
libtpu: 0.0.40
codegen_flags: <defaults>
</compile_context>

<pallas_src>
import jax
import jax.numpy as jnp
from jax.experimental import pallas as pl
from jax.experimental.pallas import tpu as pltpu


def _quadratic_kernel(params_ref, x_ref, o_ref):
    # params_ref: (3,) f32 in SMEM -> [w1, w2, b]; read once per block.
    w1 = params_ref[0]
    w2 = params_ref[1]
    b = params_ref[2]
    x = x_ref[...].astype(jnp.float32)
    # Horner form: 2 mul + 2 add per element.
    o_ref[...] = (b + x * (w1 + w2 * x)).astype(o_ref.dtype)


def quadratic_forward(x, w1, w2, b, *, target_block_bytes=4 * 1024 * 1024):
    """Elementwise y = b + w1*x + w2*x**2. x: any shape; w1/w2/b: shape-(1,) params."""
    orig_shape = x.shape
    total = x.size
    in_dtype = x.dtype
    # Match torch promotion: float32 params * integer x -> floating output.
    out_dtype = in_dtype if jnp.issubdtype(in_dtype, jnp.floating) else jnp.float32

    params = jnp.concatenate(
        [jnp.asarray(w1).reshape(-1),
         jnp.asarray(w2).reshape(-1),
         jnp.asarray(b).reshape(-1)]
    ).astype(jnp.float32)

    def _plain(v):  # tiny-input / tail path, plain JAX (negligible bytes)
        vf = v.astype(jnp.float32)
        return (params[2] + vf * (params[0] + params[1] * vf)).astype(out_dtype)

    x_flat = x.reshape(-1)

    # Widest lane-dense layout that divides the flat size -> unmasked vst,
    # no pad/slice HBM copies in the common case.
    lane = None
    for cand in (4096, 2048, 1024, 512, 256, 128):
        if total % cand == 0:
            lane = cand
            break
    if lane is None:
        lane = 512  # bulk through the kernel, <512-elem tail in plain JAX

    bulk = (total // lane) * lane
    if bulk == 0:
        # Input smaller than one lane row: not worth a kernel launch.
        return _plain(x_flat).reshape(orig_shape)

    rows = bulk // lane
    x2d = x_flat[:bulk].reshape(rows, lane)

    # ~target_block_bytes per input buffer; dtype-aware sublane alignment
    # (f32: 8, bf16/f16: 16, int8/fp8: 32). block_rows == rows (full dim) is
    # always legal for small inputs.
    itemsize = jnp.dtype(in_dtype).itemsize
    sublane = {4: 8, 2: 16, 1: 32}.get(itemsize, 8)
    bytes_per_row = lane * itemsize
    block_rows = max(1, target_block_bytes // bytes_per_row)
    block_rows = max(sublane, (block_rows // sublane) * sublane)
    block_rows = min(block_rows, rows)

    grid = (pl.cdiv(rows, block_rows),)  # partial last block handled by Pallas

    cost = pl.CostEstimate(
        flops=4 * bulk,
        transcendentals=0,
        bytes_accessed=bulk * itemsize + bulk * jnp.dtype(out_dtype).itemsize + 12,
    )

    def _call(dim_semantics):
        return pl.pallas_call(
            _quadratic_kernel,
            out_shape=jax.ShapeDtypeStruct((rows, lane), out_dtype),
            grid_spec=pltpu.PrefetchScalarGridSpec(
                num_scalar_prefetch=0,
                grid=grid,
                in_specs=[
                    pl.BlockSpec(memory_space=pltpu.SMEM),               # (3,) params
                    pl.BlockSpec((block_rows, lane), lambda i: (i, 0)),  # x tile
                ],
                out_specs=pl.BlockSpec((block_rows, lane), lambda i: (i, 0)),
            ),
            compiler_params=pltpu.CompilerParams(
                dimension_semantics=dim_semantics,
                # 4 live buffers (in+out, double-buffered) at 4 MiB each fit
                # everywhere once the scoped limit is raised past v5e's 16 MiB
                # default; 32 MiB is within physical VMEM on v5e/v6e/v7x.
                vmem_limit_bytes=32 * 1024 * 1024,
            ),
            cost_estimate=cost,
        )(params, x2d)

    # Prefer real per-TensorCore sharding (v7x: 2 TCs); fall back to "parallel"
    # if this JAX/chip combination rejects CORE_PARALLEL.
    semantics_options = []
    core_parallel = getattr(pltpu, "CORE_PARALLEL", None)
    if core_parallel is not None:
        semantics_options.append((core_parallel,))
    semantics_options.append(("parallel",))

    out2d = None
    last_err = None
    for sem in semantics_options:
        try:
            out2d = _call(sem)
            break
        except Exception as e:  # lowering/compile rejection -> try next option
            last_err = e
    if out2d is None:
        raise last_err

    out_flat = out2d.reshape(-1)
    if bulk != total:
        out_flat = jnp.concatenate([out_flat, _plain(x_flat[bulk:])])
    return out_flat.reshape(orig_shape)


if __name__ == "__main__":
    key = jax.random.PRNGKey(0)
    kx, k1, k2, kb = jax.random.split(key, 4)

    # Parameter init matching init.normal_(mean=0, std=0.01).
    w1 = 0.01 * jax.random.normal(k1, (1,), dtype=jnp.float32)
    w2 = 0.01 * jax.random.normal(k2, (1,), dtype=jnp.float32)
    b = 0.01 * jax.random.normal(kb, (1,), dtype=jnp.float32)

    # Small example input (elementwise op, layout is free).
    x = jax.random.normal(kx, (2, 4, 16, 16), dtype=jnp.float32)

    y = quadratic_forward(x, w1, w2, b)
    y = jax.block_until_ready(y)

    # Pure-JAX reference check.
    y_ref = b[0] + w1[0] * x + w2[0] * x ** 2
    assert jnp.allclose(y, y_ref, atol=1e-6, rtol=1e-6)

    # Exercise the non-divisible (bulk + plain-JAX tail) path too.
    x_odd = jax.random.normal(kx, (1000,), dtype=jnp.float32)
    y_odd = jax.block_until_ready(quadratic_forward(x_odd, w1, w2, b))
    y_odd_ref = b[0] + w1[0] * x_odd + w2[0] * x_odd ** 2
    assert jnp.allclose(y_odd, y_odd_ref, atol=1e-6, rtol=1e-6)

    print("KERNEL_OK")
</pallas_src>

<mosaic_0001>
module attributes {stable_mosaic.version = 11 : i64} {
  func.func @_quadratic_kernel(%arg0: i32, %arg1: memref<3xf32, #tpu.memory_space<smem>>, %arg2: memref<1x2048xf32, #tpu.memory_space<vmem>>, %arg3: memref<1x2048xf32, #tpu.memory_space<vmem>>) attributes {dimension_semantics = [#tpu.dimension_semantics<core_parallel>], iteration_bounds = array<i64: 1>, scalar_prefetch = 0 : i64, scratch_operands = 0 : i64, tpu.core_type = #tpu.core_type<tc>, window_params = [{transform_indices = @transform_0, window_bounds = array<i64: 3>}, {transform_indices = @transform_1, window_bounds = array<i64: 1, 2048>}, {transform_indices = @transform_2, window_bounds = array<i64: 1, 2048>}]} {
    %c0 = arith.constant 0 : index
    %0 = memref.load %arg1[%c0] : memref<3xf32, #tpu.memory_space<smem>>
    %c1 = arith.constant 1 : index
    %1 = memref.load %arg1[%c1] : memref<3xf32, #tpu.memory_space<smem>>
    %c2 = arith.constant 2 : index
    %2 = memref.load %arg1[%c2] : memref<3xf32, #tpu.memory_space<smem>>
    %c0_0 = arith.constant 0 : index
    %c0_1 = arith.constant 0 : index
    %3 = vector.load %arg2[%c0_0, %c0_1] : memref<1x2048xf32, #tpu.memory_space<vmem>>, vector<1x2048xf32>
    %4 = vector.broadcast %1 : f32 to vector<1x2048xf32>
    %5 = arith.mulf %4, %3 : vector<1x2048xf32>
    %6 = vector.broadcast %0 : f32 to vector<1x2048xf32>
    %7 = arith.addf %6, %5 : vector<1x2048xf32>
    %8 = arith.mulf %3, %7 : vector<1x2048xf32>
    %9 = vector.broadcast %2 : f32 to vector<1x2048xf32>
    %10 = arith.addf %9, %8 : vector<1x2048xf32>
    %c0_2 = arith.constant 0 : index
    %c0_3 = arith.constant 0 : index
    %11 = vector.load %arg3[%c0_2, %c0_3] : memref<1x2048xf32, #tpu.memory_space<vmem>>, vector<1x2048xf32>
    tpu.vector_store %arg3[%c0_2, %c0_3], %10 {strides = array<i32>} : memref<1x2048xf32, #tpu.memory_space<vmem>>, vector<1x2048xf32>,
    return
  }
  func.func @transform_0(%arg0: i32) -> i32 {
    %c0_i32 = arith.constant 0 : i32
    %c0_i32_0 = arith.constant 0 : i32
    return %c0_i32 : i32
  }
  func.func @transform_1(%arg0: i32) -> (i32, i32) {
    %c0_i32 = arith.constant 0 : i32
    %c0_i32_0 = arith.constant 0 : i32
    return %arg0, %c0_i32 : i32, i32
  }
  func.func @transform_2(%arg0: i32) -> (i32, i32) {
    %c0_i32 = arith.constant 0 : i32
    %c0_i32_0 = arith.constant 0 : i32
    return %arg0, %c0_i32 : i32, i32
  }
}

module attributes {stable_mosaic.version = 11 : i64} {
  func.func @_quadratic_kernel(%arg0: i32, %arg1: memref<3xf32, #tpu.memory_space<smem>>, %arg2: memref<1x2048xf32, #tpu.memory_space<vmem>>, %arg3: memref<1x2048xf32, #tpu.memory_space<vmem>>) attributes {dimension_semantics = [#tpu.dimension_semantics<parallel>], iteration_bounds = array<i64: 1>, scalar_prefetch = 0 : i64, scratch_operands = 0 : i64, tpu.core_type = #tpu.core_type<tc>, window_params = [{transform_indices = @transform_0, window_bounds = array<i64: 3>}, {transform_indices = @transform_1, window_bounds = array<i64: 1, 2048>}, {transform_indices = @transform_2, window_bounds = array<i64: 1, 2048>}]} {
    %c0 = arith.constant 0 : index
    %0 = memref.load %arg1[%c0] : memref<3xf32, #tpu.memory_space<smem>>
    %c1 = arith.constant 1 : index
    %1 = memref.load %arg1[%c1] : memref<3xf32, #tpu.memory_space<smem>>
    %c2 = arith.constant 2 : index
    %2 = memref.load %arg1[%c2] : memref<3xf32, #tpu.memory_space<smem>>
    %c0_0 = arith.constant 0 : index
    %c0_1 = arith.constant 0 : index
    %3 = vector.load %arg2[%c0_0, %c0_1] : memref<1x2048xf32, #tpu.memory_space<vmem>>, vector<1x2048xf32>
    %4 = vector.broadcast %1 : f32 to vector<1x2048xf32>
    %5 = arith.mulf %4, %3 : vector<1x2048xf32>
    %6 = vector.broadcast %0 : f32 to vector<1x2048xf32>
    %7 = arith.addf %6, %5 : vector<1x2048xf32>
    %8 = arith.mulf %3, %7 : vector<1x2048xf32>
    %9 = vector.broadcast %2 : f32 to vector<1x2048xf32>
    %10 = arith.addf %9, %8 : vector<1x2048xf32>
    %c0_2 = arith.constant 0 : index
    %c0_3 = arith.constant 0 : index
    %11 = vector.load %arg3[%c0_2, %c0_3] : memref<1x2048xf32, #tpu.memory_space<vmem>>, vector<1x2048xf32>
    tpu.vector_store %arg3[%c0_2, %c0_3], %10 {strides = array<i32>} : memref<1x2048xf32, #tpu.memory_space<vmem>>, vector<1x2048xf32>,
    return
  }
  func.func @transform_0(%arg0: i32) -> i32 {
    %c0_i32 = arith.constant 0 : i32
    %c0_i32_0 = arith.constant 0 : i32
    return %c0_i32 : i32
  }
  func.func @transform_1(%arg0: i32) -> (i32, i32) {
    %c0_i32 = arith.constant 0 : i32
    %c0_i32_0 = arith.constant 0 : i32
    return %arg0, %c0_i32 : i32, i32
  }
  func.func @transform_2(%arg0: i32) -> (i32, i32) {
    %c0_i32 = arith.constant 0 : i32
    %c0_i32_0 = arith.constant 0 : i32
    return %arg0, %c0_i32 : i32, i32
  }
}

</mosaic_0001>

<bundles_post_ra>
// kernel: tpu_custom_call.1
= control target key start
LH: loop header
LB: loop body
LE: loop exit
PB: predicated region body
PF: predicated region fallthrough
CT: control target
= control target key end

     0   :  { %s174_s9 = sld [smem:[#allocation0]]   ;;  %s196_s0 = inlined_call_operand.hbm [shape: f32[3], index: 0, kind: input, shape index: {}]   ;;  %s197_s1 = inlined_call_operand.hbm [shape: f32[1,2048], index: 1, kind: input, shape index: {}]   ;;  %s198_s2 = inlined_call_operand.hbm [shape: f32[1,2048], index: 2, kind: output, shape index: {}]  }
   0x1   :  { %7 = vsyncpa [#allocation5], 0 }
   0x2   :  { %8 = vsyncpa [#allocation3], 0 }
   0x3   :  { %9 = vsyncpa [#allocation4], 0  ;;  %s15_s12 = sshll.u32 %s196_s0, 4  ;;  %s156_s14 = smov [#allocation2]   ;;  %s16_s12 = int_to_ptr.hbm [resolvable:$true] %s15_s12 }
   0x4   :  { %18 = dma.hbm_to_smem %s16_s12, 16, %s156_s14, [#allocation5]  }
   0x5   :  { %s157_s19 = smov [#allocation6]   ;;  %s106_s24 = scalar_lea.hbm %s197_s1, 16 }
   0x6   :  { %s83_s13 = sshll.u32 %s174_s9, 4  ;;  %s28_s20 = sshll.u32 %s157_s19, 4  ;;  %s29_s20 = int_to_ptr.vmem [resolvable:$true] %s28_s20 }
   0x7   :  { %s24_s17 = scalar_lea.hbm %s197_s1, %s83_s13 }
   0x8   :  { %s26_s18 = sshll.u32 %s24_s17, 4  ;;  %s27_s18 = int_to_ptr.hbm [resolvable:$true] %s26_s18 }
   0x9   :  { %s102_s21 = sshra.s32 %s27_s18, 4  ;;  %s103_s21 = int_to_ptr.hbm [resolvable:$true] %s102_s21 }
   0xa   :  { %s104_s22 = scalar_lea.hbm %s103_s21, 16 }
   0xb   :  { %p105_p0 = scmp.ne.s32.totalorder %s103_s21, %s104_s22  ;;  %p108_p1 = scmp.lt.s32.totalorder %s106_s24, %s104_s22 }
   0xd   :  { %p110_p2 = pnand %p108_p1, %p105_p0 }
   0xf   :  { %113 = shalt.err (!%p110_p2)
}
  0x10   :  { %31 = dma.hbm_to_vmem [thread:$0]  %s27_s18, 256, %s29_s20, [#allocation3]  }
  0x11   :  { %150 = dma.done.wait [#allocation5], 16  }
  0x12   :  { %151 = vsyncadd [#allocation5], 4294967280 }
  0x13   :  { %152 = dma.done.wait [#allocation3], 256  }
  0x14   :  { %153 = vsyncadd [#allocation3], 4294967040 }
  0x15   :  { %40 = sfence }
  0x16   :  { %s41_s25 = sld [smem:[#allocation2]]  ;;  %v44_v0 = vld [vmem:[#allocation6] sm:$0xff]  ;;  %v45_v1 = vld [vmem:[#allocation6 + $0x8] sm:$0xff]  ;;  %s64_s29 = scalar_lea.hbm %s198_s2, %s83_s13 }
  0x17   :  { %s84_s26 = sld [smem:[#allocation2 + $0x1]]  ;;  %s158_s30 = smov [#allocation7]  }
  0x18   :  { %s85_s27 = sld [smem:[#allocation2 + $0x2]]  ;;  %s66_s3 = sshll.u32 %s158_s30, 4  ;;  %s67_s3 = int_to_ptr.vmem [resolvable:$true] %s66_s3 }
  0x19   :  { %s68_s4 = sshll.u32 %s64_s29, 4  ;;  %s142_s9 = scalar_lea.hbm %s198_s2, 16  ;;  %s69_s4 = int_to_ptr.hbm [resolvable:$true] %s68_s4 }
  0x1a   :  { %s138_s5 = sshra.s32 %s69_s4, 4  ;;  %s139_s5 = int_to_ptr.hbm [resolvable:$true] %s138_s5 }
  0x1b   :  { %s140_s6 = scalar_lea.hbm %s139_s5, 16 }
  0x1c   :  { %v49_v3 = vstv %s41_s25  ;;  %p141_p3 = scmp.ne.s32.totalorder %s139_s5, %s140_s6  ;;  %p144_p4 = scmp.lt.s32.totalorder %s142_s9, %s140_s6 }
  0x1d   :  { %v46_v2 = vstv %s84_s26 }
  0x1e   :  { %v47_v4 = vmul.f32 %v46_v2, %v44_v0  ;;  %v48_v5 = vmul.f32 %v46_v2, %v45_v1  ;;  %v54_v8 = vstv %s85_s27  ;;  %p146_p5 = pnand %p144_p4, %p141_p3 }
  0x20   :  { %v50_v6 = vadd.f32 %v49_v3, %v47_v4  ;;  %v51_v7 = vadd.f32 %v49_v3, %v48_v5 }
  0x22   :  { %v52_v9 = vmul.f32 %v50_v6, %v44_v0  ;;  %v53_v10 = vmul.f32 %v51_v7, %v45_v1 }
  0x24   :  { %v55_v11 = vadd.f32 %v54_v8, %v52_v9  ;;  %v56_v12 = vadd.f32 %v54_v8, %v53_v10 }
  0x26   :  { %57 = vst [vmem:[#allocation7] sm:$0xff] %v55_v11 }
  0x27   :  { %58 = vst [vmem:[#allocation7 + $0x8] sm:$0xff] %v56_v12 }
  0x28   :  { %149 = shalt.err (!%p146_p5)
}
  0x29   :  { %71 = dma.vmem_to_hbm [thread:$0]  %s67_s3, 256, %s69_s4, [#allocation4]  }
  0x2a   :  { %154 = dma.done.wait [#allocation4], 256  }
  0x2b   :  { %155 = vsyncadd [#allocation4], 4294967040 }
  0x2c   :  { %76 = vsyncpa [#allocation3], 1 }
  0x2d   :  { %77 = vsyncpa [#allocation4], 1 }
  0x2e   :  { %78 = vsyncpa [#allocation5], 1 }

// kernel: tpu_custom_call.1
= control target key start
LH: loop header
LB: loop body
LE: loop exit
PB: predicated region body
PF: predicated region fallthrough
CT: control target
= control target key end

     0   :  { %7 = vsyncpa [#allocation5], 0  ;;  %s173_s0 = inlined_call_operand.hbm [shape: f32[3], index: 0, kind: input, shape index: {}]   ;;  %s174_s1 = inlined_call_operand.hbm [shape: f32[1,2048], index: 1, kind: input, shape index: {}]   ;;  %s175_s2 = inlined_call_operand.hbm [shape: f32[1,2048], index: 2, kind: output, shape index: {}]  }
   0x1   :  { %8 = vsyncpa [#allocation3], 0 }
   0x2   :  { %9 = vsyncpa [#allocation4], 0  ;;  %s15_s11 = sshll.u32 %s173_s0, 4  ;;  %s24_s14 = sshll.u32 %s174_s1, 4  ;;  %s16_s11 = int_to_ptr.hbm [resolvable:$true] %s15_s11  ;;  %s25_s14 = int_to_ptr.hbm [resolvable:$true] %s24_s14 }
   0x3   :  { %s146_s15 = smov [#allocation2]   ;;  %s147_s16 = smov [#allocation6]  }
   0x4   :  { %18 = dma.hbm_to_smem %s16_s11, 16, %s146_s15, [#allocation5]  }
   0x5   :  { %s26_s17 = sshll.u32 %s147_s16, 4  ;;  %s27_s17 = int_to_ptr.vmem [resolvable:$true] %s26_s17 }
   0x6   :  { %29 = dma.hbm_to_vmem [thread:$0]  %s25_s14, 256, %s27_s17, [#allocation3]  }
   0x7   :  { %140 = dma.done.wait [#allocation5], 16  }
   0x8   :  { %141 = vsyncadd [#allocation5], 4294967280 }
   0x9   :  { %142 = dma.done.wait [#allocation3], 256  }
   0xa   :  { %143 = vsyncadd [#allocation3], 4294967040 }
   0xb   :  { %38 = sfence }
   0xc   :  { %s39_s18 = sld [smem:[#allocation2]]  ;;  %v42_v0 = vld [vmem:[#allocation6] sm:$0xff]  ;;  %v43_v1 = vld [vmem:[#allocation6 + $0x8] sm:$0xff]  ;;  %s148_s1 = smov [#allocation7]  }
   0xd   :  { %s75_s19 = sld [smem:[#allocation2 + $0x1]]  ;;  %s62_s20 = sshll.u32 %s148_s1, 4  ;;  %s63_s20 = int_to_ptr.vmem [resolvable:$true] %s62_s20 }
   0xe   :  { %s76_s0 = sld [smem:[#allocation2 + $0x2]]  ;;  %s64_s23 = sshll.u32 %s175_s2, 4  ;;  %s65_s23 = int_to_ptr.hbm [resolvable:$true] %s64_s23 }
  0x12   :  { %v47_v3 = vstv %s39_s18 }
  0x13   :  { %v44_v2 = vstv %s75_s19 }
  0x14   :  { %v45_v4 = vmul.f32 %v44_v2, %v42_v0  ;;  %v46_v5 = vmul.f32 %v44_v2, %v43_v1  ;;  %v52_v8 = vstv %s76_s0 }
  0x16   :  { %v48_v6 = vadd.f32 %v47_v3, %v45_v4  ;;  %v49_v7 = vadd.f32 %v47_v3, %v46_v5 }
  0x18   :  { %v50_v9 = vmul.f32 %v48_v6, %v42_v0  ;;  %v51_v10 = vmul.f32 %v49_v7, %v43_v1 }
  0x1a   :  { %v53_v11 = vadd.f32 %v52_v8, %v50_v9  ;;  %v54_v12 = vadd.f32 %v52_v8, %v51_v10 }
  0x1c   :  { %55 = vst [vmem:[#allocation7] sm:$0xff] %v53_v11 }
  0x1d   :  { %56 = vst [vmem:[#allocation7 + $0x8] sm:$0xff] %v54_v12 }
  0x1e   :  { %67 = dma.vmem_to_hbm [thread:$0]  %s63_s20, 256, %s65_s23, [#allocation4]  }
  0x1f   :  { %144 = dma.done.wait [#allocation4], 256  }
  0x20   :  { %145 = vsyncadd [#allocation4], 4294967040 }
  0x21   :  { %72 = vsyncpa [#allocation3], 1 }
  0x22   :  { %73 = vsyncpa [#allocation4], 1 }
  0x23   :  { %74 = vsyncpa [#allocation5], 1 }

</bundles_post_ra>
